<compile_context>
chip_gen: v7x
topology: tpu7x:2x2x1
jax: 0.10.0
libtpu: 0.0.40
codegen_flags: <defaults>
</compile_context>

<pallas_src>
import math
import jax
import jax.numpy as jnp
from jax.experimental import pallas as pl
from jax.experimental.pallas import tpu as pltpu


def lstm_cell_kernel(x_ref, h_ref, c_ref, wx_ref, wh_ref, b_ref, hc_ref):
    """One batch block of a single LSTM cell step.

    x_ref : (bb, D)    input activations
    h_ref : (bb, H)    previous hidden state
    c_ref : (bb, H)    previous cell state
    wx_ref: (D, 4H)    W_x^T   (grid-invariant)
    wh_ref: (H, 4H)    W_h^T   (grid-invariant)
    b_ref : (1, 4H)    pre-summed bias, f32 (grid-invariant)
    hc_ref: (bb, 2H)   fused output [h2 | c2]
    """
    H = c_ref.shape[-1]
    G = 4 * H

    # Two MXU pushes into one f32 accumulator (no wrapper-side [x, h] concat).
    gates = jnp.dot(x_ref[...], wx_ref[...], preferred_element_type=jnp.float32)
    gates = gates + jnp.dot(h_ref[...], wh_ref[...], preferred_element_type=jnp.float32)
    gates = gates + b_ref[...]

    # Full-width activation of the 128-lane gate slab:
    #   sigmoid(x) = 0.5 * (1 + tanh(0.5 * x))   (exact identity)
    # i/f/o lanes get the 0.5 pre-scale + affine; g lanes are a plain tanh.
    lane = jax.lax.broadcasted_iota(jnp.int32, (1, G), 1)
    is_g = jnp.logical_and(lane >= 2 * H, lane < 3 * H)
    scale = jnp.where(is_g, jnp.float32(1.0), jnp.float32(0.5))
    t = jnp.tanh(gates * scale)                     # single lane-dense EUP pass
    act = jnp.where(is_g, t, 0.5 * t + 0.5)

    i = act[:, 0 * H:1 * H]
    f = act[:, 1 * H:2 * H]
    g = act[:, 2 * H:3 * H]
    o = act[:, 3 * H:4 * H]

    c2 = f * c_ref[...].astype(jnp.float32) + i * g
    h2 = o * jnp.tanh(c2)

    # Single fused output slab [h2 | c2]: one writeback stream, 2x lane density.
    hc_ref[:, 0:H] = h2.astype(hc_ref.dtype)
    hc_ref[:, H:2 * H] = c2.astype(hc_ref.dtype)


def lstm_cell_pallas(x, h, c, w_ih, w_hh, b_ih, b_hh, *, block_b=1024, mxu_dtype=None):
    """x: (B, D); h, c: (B, H); w_ih: (4H, D); w_hh: (4H, H); b_*: (4H,).
    Returns (h2, c2), each (B, H).

    block_b : batch rows per grid step (>=2 blocks feed both v7x TensorCores for large B).
    mxu_dtype: optional (e.g. jnp.bfloat16) cast of activations/weights fed to the MXU;
               elementwise gate math stays f32. Default None keeps exact f32 matmuls.
    """
    B, D = x.shape
    H = h.shape[-1]
    G = 4 * H
    out_dtype = c.dtype

    # Weight transposes / bias sum live in the wrapper (hoisted by jit, done once per
    # compiled step — keep them outside any per-timestep scan in caller code).
    wx = w_ih.T                                                       # (D, 4H)
    wh = w_hh.T                                                       # (H, 4H)
    b = (b_ih.astype(jnp.float32) + b_hh.astype(jnp.float32)).reshape(1, G)

    if mxu_dtype is not None:
        x = x.astype(mxu_dtype)
        h = h.astype(mxu_dtype)
        wx = wx.astype(mxu_dtype)
        wh = wh.astype(mxu_dtype)

    # Pad batch only to sublane granularity (8) — never to a multiple of block_b.
    B8 = -(-B // 8) * 8
    if B8 != B:
        pad = B8 - B
        x = jnp.pad(x, ((0, pad), (0, 0)))
        h = jnp.pad(h, ((0, pad), (0, 0)))
        c = jnp.pad(c, ((0, pad), (0, 0)))

    bb = min(block_b, B8)                 # multiple of 8 by construction
    nb = pl.cdiv(B8, bb)                  # partial last block handled by masked writes

    hc = pl.pallas_call(
        lstm_cell_kernel,
        out_shape=jax.ShapeDtypeStruct((B8, 2 * H), out_dtype),
        grid_spec=pltpu.PrefetchScalarGridSpec(
            num_scalar_prefetch=0,
            grid=(nb,),
            in_specs=[
                pl.BlockSpec((bb, D), lambda i: (i, 0)),   # x batch block
                pl.BlockSpec((bb, H), lambda i: (i, 0)),   # h batch block
                pl.BlockSpec((bb, H), lambda i: (i, 0)),   # c batch block
                pl.BlockSpec((D, G), lambda i: (0, 0)),    # W_x^T (invariant)
                pl.BlockSpec((H, G), lambda i: (0, 0)),    # W_h^T (invariant)
                pl.BlockSpec((1, G), lambda i: (0, 0)),    # fused bias (invariant)
            ],
            out_specs=pl.BlockSpec((bb, 2 * H), lambda i: (i, 0)),   # [h2 | c2]
        ),
        compiler_params=pltpu.CompilerParams(
            # Independent batch blocks -> megacore parallel on v7x, no-op elsewhere.
            dimension_semantics=("parallel",)),
    )(x, h, c, wx, wh, b)

    h2 = hc[:B, :H]
    c2 = hc[:B, H:]
    return h2, c2


def _sigmoid(x):
    return 1.0 / (1.0 + jnp.exp(-x))


def lstm_cell_ref(x, h, c, w_ih, w_hh, b_ih, b_hh):
    """Pure-JAX reference mirroring LSTMCell.forward (chunk order i, f, g, o)."""
    H = h.shape[-1]
    gates = x @ w_ih.T + b_ih + h @ w_hh.T + b_hh
    i = _sigmoid(gates[:, 0 * H:1 * H])
    f = _sigmoid(gates[:, 1 * H:2 * H])
    g = jnp.tanh(gates[:, 2 * H:3 * H])
    o = _sigmoid(gates[:, 3 * H:4 * H])
    c2 = f * c + i * g
    h2 = o * jnp.tanh(c2)
    return h2, c2


def _make_inputs(key, B, D, H, dtype=jnp.float32):
    std = 1.0 / math.sqrt(H)
    ks = jax.random.split(key, 7)
    x = jax.random.normal(ks[0], (B, D), dtype)
    h = jax.random.normal(ks[1], (B, H), dtype)
    c = jax.random.normal(ks[2], (B, H), dtype)
    w_ih = jax.random.uniform(ks[3], (4 * H, D), dtype, -std, std)
    w_hh = jax.random.uniform(ks[4], (4 * H, H), dtype, -std, std)
    b_ih = jax.random.uniform(ks[5], (4 * H,), dtype, -std, std)
    b_hh = jax.random.uniform(ks[6], (4 * H,), dtype, -std, std)
    return x, h, c, w_ih, w_hh, b_ih, b_hh


def _check(args, cell):
    h2, c2 = cell(*args)
    h2, c2 = jax.block_until_ready(h2), jax.block_until_ready(c2)
    h2_r, c2_r = lstm_cell_ref(*args)
    assert h2.shape == h2_r.shape and c2.shape == c2_r.shape
    assert jnp.allclose(h2, h2_r, atol=1e-5, rtol=1e-5)
    assert jnp.allclose(c2, c2_r, atol=1e-5, rtol=1e-5)


if __name__ == "__main__":
    key = jax.random.PRNGKey(0)
    k1, k2, k3 = jax.random.split(key, 3)
    cell = jax.jit(lstm_cell_pallas)

    # Small shapes implied by the module: batch=2, input=16, hidden=32 (gate slab 4H = 128 lanes).
    _check(_make_inputs(k1, B=2, D=16, H=32), cell)

    # Larger batch: single 160-row block, no block padding waste.
    _check(_make_inputs(k2, B=160, D=16, H=32), cell)

    # Multi-block grid with a non-8-aligned batch and a partial last block
    # (B=84 -> pad to 88, block_b=32 -> 3 grid steps, masked tail writes).
    cell_small_blocks = jax.jit(lambda *a: lstm_cell_pallas(*a, block_b=32))
    _check(_make_inputs(k3, B=84, D=16, H=32), cell_small_blocks)

    print("KERNEL_OK")
</pallas_src>

<mosaic_0001>
module attributes {stable_mosaic.version = 11 : i64} {
  func.func @lstm_cell_kernel(%arg0: i32, %arg1: memref<8x16xf32, #tpu.memory_space<vmem>>, %arg2: memref<8x32xf32, #tpu.memory_space<vmem>>, %arg3: memref<8x32xf32, #tpu.memory_space<vmem>>, %arg4: memref<16x128xf32, #tpu.memory_space<vmem>>, %arg5: memref<32x128xf32, #tpu.memory_space<vmem>>, %arg6: memref<1x128xf32, #tpu.memory_space<vmem>>, %arg7: memref<8x64xf32, #tpu.memory_space<vmem>>) attributes {dimension_semantics = [#tpu.dimension_semantics<parallel>], iteration_bounds = array<i64: 1>, scalar_prefetch = 0 : i64, scratch_operands = 0 : i64, tpu.core_type = #tpu.core_type<tc>, window_params = [{transform_indices = @transform_0, window_bounds = array<i64: 8, 16>}, {transform_indices = @transform_1, window_bounds = array<i64: 8, 32>}, {transform_indices = @transform_2, window_bounds = array<i64: 8, 32>}, {pipeline_mode = #tpu.pipeline_mode<synchronous>, transform_indices = @transform_3, window_bounds = array<i64: 16, 128>}, {pipeline_mode = #tpu.pipeline_mode<synchronous>, transform_indices = @transform_4, window_bounds = array<i64: 32, 128>}, {pipeline_mode = #tpu.pipeline_mode<synchronous>, transform_indices = @transform_5, window_bounds = array<i64: 1, 128>}, {transform_indices = @transform_6, window_bounds = array<i64: 8, 64>}]} {
    %c0 = arith.constant 0 : index
    %c0_0 = arith.constant 0 : index
    %0 = vector.load %arg1[%c0, %c0_0] : memref<8x16xf32, #tpu.memory_space<vmem>>, vector<8x16xf32>
    %c0_1 = arith.constant 0 : index
    %c0_2 = arith.constant 0 : index
    %1 = vector.load %arg4[%c0_1, %c0_2] : memref<16x128xf32, #tpu.memory_space<vmem>>, vector<16x128xf32>
    %cst = arith.constant dense<0.000000e+00> : vector<8x128xf32>
    %2 = tpu.matmul %0, %1, %cst {dimension_numbers = #tpu.dot_dimension_numbers<[1], [0], [0], [1], [0, 0, 1, 1], [], []>} : vector<8x16xf32>, vector<16x128xf32>, vector<8x128xf32> -> vector<8x128xf32>
    %c0_3 = arith.constant 0 : index
    %c0_4 = arith.constant 0 : index
    %3 = vector.load %arg2[%c0_3, %c0_4] : memref<8x32xf32, #tpu.memory_space<vmem>>, vector<8x32xf32>
    %c0_5 = arith.constant 0 : index
    %c0_6 = arith.constant 0 : index
    %4 = vector.load %arg5[%c0_5, %c0_6] : memref<32x128xf32, #tpu.memory_space<vmem>>, vector<32x128xf32>
    %cst_7 = arith.constant dense<0.000000e+00> : vector<8x128xf32>
    %5 = tpu.matmul %3, %4, %cst_7 {dimension_numbers = #tpu.dot_dimension_numbers<[1], [0], [0], [1], [0, 0, 1, 1], [], []>} : vector<8x32xf32>, vector<32x128xf32>, vector<8x128xf32> -> vector<8x128xf32>
    %6 = arith.addf %2, %5 : vector<8x128xf32>
    %c0_8 = arith.constant 0 : index
    %c0_9 = arith.constant 0 : index
    %7 = vector.load %arg6[%c0_8, %c0_9] : memref<1x128xf32, #tpu.memory_space<vmem>>, vector<1x128xf32>
    %8 = vector.broadcast %7 : vector<1x128xf32> to vector<8x128xf32>
    %9 = arith.addf %6, %8 : vector<8x128xf32>
    %10 = tpu.iota {dimensions = array<i32: 1>} : vector<1x128xi32>
    %c64_i32 = arith.constant 64 : i32
    %11 = vector.broadcast %c64_i32 : i32 to vector<1x128xi32>
    %12 = arith.cmpi sge, %10, %11 : vector<1x128xi32>
    %c96_i32 = arith.constant 96 : i32
    %13 = vector.broadcast %c96_i32 : i32 to vector<1x128xi32>
    %14 = arith.cmpi slt, %10, %13 : vector<1x128xi32>
    %15 = arith.andi %12, %14 : vector<1x128xi1>
    %cst_10 = arith.constant 1.000000e+00 : f32
    %cst_11 = arith.constant 5.000000e-01 : f32
    %16 = vector.broadcast %cst_10 : f32 to vector<1x128xf32>
    %17 = vector.broadcast %cst_11 : f32 to vector<1x128xf32>
    %18 = arith.select %15, %16, %17 : vector<1x128xi1>, vector<1x128xf32>
    %19 = vector.broadcast %18 : vector<1x128xf32> to vector<8x128xf32>
    %20 = arith.mulf %9, %19 : vector<8x128xf32>
    %21 = math.tanh %20 : vector<8x128xf32>
    %cst_12 = arith.constant 5.000000e-01 : f32
    %22 = vector.broadcast %cst_12 : f32 to vector<8x128xf32>
    %23 = arith.mulf %22, %21 : vector<8x128xf32>
    %cst_13 = arith.constant 5.000000e-01 : f32
    %24 = vector.broadcast %cst_13 : f32 to vector<8x128xf32>
    %25 = arith.addf %23, %24 : vector<8x128xf32>
    %26 = vector.shape_cast %15 : vector<1x128xi1> to vector<1x128xi1>
    %27 = vector.broadcast %26 : vector<1x128xi1> to vector<8x128xi1>
    %28 = arith.select %27, %21, %25 : vector<8x128xi1>, vector<8x128xf32>
    %29 = vector.extract_strided_slice %28 {offsets = [0, 0], sizes = [8, 32], strides = [1, 1]} : vector<8x128xf32> to vector<8x32xf32>
    %30 = vector.extract_strided_slice %28 {offsets = [0, 32], sizes = [8, 32], strides = [1, 1]} : vector<8x128xf32> to vector<8x32xf32>
    %31 = vector.extract_strided_slice %28 {offsets = [0, 64], sizes = [8, 32], strides = [1, 1]} : vector<8x128xf32> to vector<8x32xf32>
    %32 = vector.extract_strided_slice %28 {offsets = [0, 96], sizes = [8, 32], strides = [1, 1]} : vector<8x128xf32> to vector<8x32xf32>
    %c0_14 = arith.constant 0 : index
    %c0_15 = arith.constant 0 : index
    %33 = vector.load %arg3[%c0_14, %c0_15] : memref<8x32xf32, #tpu.memory_space<vmem>>, vector<8x32xf32>
    %34 = arith.mulf %30, %33 : vector<8x32xf32>
    %35 = arith.mulf %29, %31 : vector<8x32xf32>
    %36 = arith.addf %34, %35 : vector<8x32xf32>
    %37 = math.tanh %36 : vector<8x32xf32>
    %38 = arith.mulf %32, %37 : vector<8x32xf32>
    %c0_16 = arith.constant 0 : index
    %c0_17 = arith.constant 0 : index
    %39 = vector.load %arg7[%c0_16, %c0_17] : memref<8x64xf32, #tpu.memory_space<vmem>>, vector<8x32xf32>
    tpu.vector_store %arg7[%c0_16, %c0_17], %38 {strides = array<i32>} : memref<8x64xf32, #tpu.memory_space<vmem>>, vector<8x32xf32>,
    %c0_18 = arith.constant 0 : index
    %c32 = arith.constant 32 : index
    %40 = vector.load %arg7[%c0_18, %c32] : memref<8x64xf32, #tpu.memory_space<vmem>>, vector<8x32xf32>
    tpu.vector_store %arg7[%c0_18, %c32], %36 {strides = array<i32>} : memref<8x64xf32, #tpu.memory_space<vmem>>, vector<8x32xf32>,
    return
  }
  func.func @transform_0(%arg0: i32) -> (i32, i32) {
    %c0_i32 = arith.constant 0 : i32
    %c0_i32_0 = arith.constant 0 : i32
    return %arg0, %c0_i32 : i32, i32
  }
  func.func @transform_1(%arg0: i32) -> (i32, i32) {
    %c0_i32 = arith.constant 0 : i32
    %c0_i32_0 = arith.constant 0 : i32
    return %arg0, %c0_i32 : i32, i32
  }
  func.func @transform_2(%arg0: i32) -> (i32, i32) {
    %c0_i32 = arith.constant 0 : i32
    %c0_i32_0 = arith.constant 0 : i32
    return %arg0, %c0_i32 : i32, i32
  }
  func.func @transform_3(%arg0: i32) -> (i32, i32) {
    %c0_i32 = arith.constant 0 : i32
    %c0_i32_0 = arith.constant 0 : i32
    %c0_i32_1 = arith.constant 0 : i32
    return %c0_i32, %c0_i32_0 : i32, i32
  }
  func.func @transform_4(%arg0: i32) -> (i32, i32) {
    %c0_i32 = arith.constant 0 : i32
    %c0_i32_0 = arith.constant 0 : i32
    %c0_i32_1 = arith.constant 0 : i32
    return %c0_i32, %c0_i32_0 : i32, i32
  }
  func.func @transform_5(%arg0: i32) -> (i32, i32) {
    %c0_i32 = arith.constant 0 : i32
    %c0_i32_0 = arith.constant 0 : i32
    %c0_i32_1 = arith.constant 0 : i32
    return %c0_i32, %c0_i32_0 : i32, i32
  }
  func.func @transform_6(%arg0: i32) -> (i32, i32) {
    %c0_i32 = arith.constant 0 : i32
    %c0_i32_0 = arith.constant 0 : i32
    return %arg0, %c0_i32 : i32, i32
  }
}

</mosaic_0001>

<bundles_post_ra>
// kernel: lstm_cell_pallas.1
= control target key start
LH: loop header
LB: loop body
LE: loop exit
PB: predicated region body
PF: predicated region fallthrough
CT: control target
= control target key end

     0   :  { %v281_v0 = vmov 0.0|0.0   ;;  %vm282_vm0 = vmmov 0   ;;  %v283_v8 = vmov 0.0   ;;  %vm105_vm1 = vcmask 130048   ;;  %s286_s14 = smov 32   ;;  %s360_s4 = inlined_call_operand.vmem [shape: f32[32,128], index: 4, kind: input, shape index: {}]   ;;  %s361_s3 = inlined_call_operand.vmem [shape: f32[16,128], index: 3, kind: input, shape index: {}]   ;;  %s362_s0 = inlined_call_operand.vmem [shape: f32[8,16], index: 0, kind: input, shape index: {}]   ;;  %s363_s1 = inlined_call_operand.vmem [shape: f32[8,32], index: 1, kind: input, shape index: {}]   ;;  %s364_s5 = inlined_call_operand.vmem [shape: f32[1,128], index: 5, kind: input, shape index: {}]   ;;  %s365_s2 = inlined_call_operand.vmem [shape: f32[8,32], index: 2, kind: input, shape index: {}]   ;;  %s366_s6 = inlined_call_operand.vmem [shape: f32[8,64], index: 6, kind: output, shape index: {}]  }
   0x1   :  { %262 = vmatprep.subr.bf16.mxu0 %v281_v0  ;;  %v27_v1 = vld [vmem:[%s360_s4] sm:$0xff]  ;;  %v28_v2 = vld [vmem:[%s360_s4 + $0x8] sm:$0xff]  ;;  %268 = vmatprep.subr.bf16.mxu1 %v281_v0  ;;  %v29_v6 = vld [vmem:[%s360_s4 + $0x10] sm:$0xff]  ;;  %vm31_vm2 = vcmask 261120   ;;  %v187_v13 = vlaneseq  ;;  %v284_v21 = vmov 0.5   ;;  %vm227_vm6 = vcmask 523520  }
   0x2   :  { %v24_v3 = vld [vmem:[%s361_s3] sm:$0xff]  ;;  %v263_v4 = vpack.c.bf16 %v28_v2, %v27_v1  ;;  %v25_v5 = vld [vmem:[%s361_s3 + $0x8] sm:$0xff]  ;;  %v30_v7 = vld [vmem:[%s360_s4 + $0x18] sm:$0xff]  ;;  %259 = vmatprep.mubr.msk.f32.mxu1 %vm282_vm0, %v283_v8  ;;  %252 = vmatprep.mubr.msk.f32.mxu0 %vm282_vm0, %v283_v8 }
   0x3   :  { %v269_v9 = vpack.c.bf16 %v25_v5, %v24_v3  ;;  %v266_v10 = vpack.c.bf16 %v30_v7, %v29_v6  ;;  %v23_v11 = vld [vmem:[%s362_s0] sm:$0xff]  ;;  %v188_v14 = vand.u32 127, %v187_v13 }
   0x4   :  { %264 = vmatpush3.bf16.msra.mxu0 %v263_v4  ;;  %v26_v12 = vld [vmem:[%s363_s1] sm:$0xff]  ;;  %s285_s1 = smov 64  }
   0x5   :  { %265 = vmatprep.subr.bf16.mxu0 %v281_v0  ;;  %270 = vmatpush3.bf16.msra.mxu1 %v269_v9  ;;  %vm189_vm3 = vcmp.ge.s32.totalorder %v188_v14, 64  ;;  %vm190_vm4 = vcmp.lt.s32.totalorder %v188_v14, 96  ;;  %v235_v18 = vld [vmem:[%s364_s5] ss:$0 sm:$0xff] }
   0x6   :  { %vm191_vm5 = vmand %vm189_vm3, %vm190_vm4  ;;  %v200_v29 = vld [vmem:[%s365_s2] sm:$0xff] }
   0x7   :  { %v192_v22 = vsel %vm191_vm5, 1.0, %v284_v21 }
   0x8   :  { %267 = vmatpush3.bf16.msra.mxu0 %v266_v10  ;;  %260 = vmatmul.mubr.msk.f32.vlgmr.msra.gmra.mrb[0].mxu1 %vm105_vm1, %v23_v11 }
   0xb   :  { %253 = vmatmul.mubr.msk.f32.vlgmr.msra.gmra.mrb[0].mxu0 %vm31_vm2, %v26_v12 }
  0xdb   :  { %v175_v15 = vpop.f32.mrb[0].mxu1 }
  0xdc   :  { %v261_v16 = vpop.f32.mrb[1].mxu1 }
  0xde   :  { %v101_v17 = vpop.f32.mrb[0].mxu0 }
  0xdf   :  { %v176_v19 = vadd.f32 %v175_v15, %v101_v17  ;;  %v254_v20 = vpop.f32.mrb[1].mxu0 }
  0xe1   :  { %v186_v23 = vadd.f32 %v235_v18, %v176_v19 }
  0xe3   :  { %v193_v24 = vmul.f32 %v192_v22, %v186_v23 }
  0xe5   :  { %277 = vtanh.f32 %v193_v24 }
  0xef   :  { %v278_v25 = vpop.eup %277 }
  0xf0   :  { %v195_v26 = vmul.f32 0.5, %v278_v25 }
  0xf2   :  { %v196_v27 = vadd.f32 0.5, %v195_v26 }
  0xf4   :  { %v199_v28 = vsel %vm191_vm5, %v278_v25, %v196_v27 }
  0xf5   :  { %207 = vrot.lane.b32.xlu0 %v199_v28, %s285_s1 }
  0xf9   :  { %202 = vrot.lane.b32.xlu0 %v200_v29, %s286_s14 }
 0x167   :  { %v208_v30 = vpop.permute.xlu0 %207 }
 0x168   :  { %v210_v31 = vmul.f32 %v208_v30, %v199_v28 }
 0x16a   :  { %212 = vrot.lane.b32.xlu1 %v210_v31, %s286_s14 }
 0x16b   :  { %v203_v32 = vpop.permute.xlu0 %202 }
 0x16c   :  { %v205_v33 = vmul.f32 %v203_v32, %v199_v28 }
 0x1dc   :  { %v213_v34 = vpop.permute.xlu1 %212 }
 0x1dd   :  { %v215_v35 = vadd.f32 %v213_v34, %v205_v33 }
 0x1df   :  { %279 = vtanh.f32 %v215_v35 }
 0x1e9   :  { %v280_v36 = vpop.eup %279 }
 0x1ea   :  { %218 = vrot.lane.b32.xlu1 %v280_v36, %s285_s1 }
 0x25c   :  { %v219_v37 = vpop.permute.xlu1 %218 }
 0x25d   :  { %v221_v38 = vmul.f32 %v219_v37, %v199_v28 }
 0x25f   :  { %223 = vrot.lane.b32.xlu0 %v221_v38, %s286_s14 }
 0x2d1   :  { %v224_v39 = vpop.permute.xlu0 %223 }
 0x2d2   :  { %226 = vst.msk [vmem:[%s366_s6] sm:$0xff] %vm31_vm2, %v224_v39 }
 0x2d3   :  { %228 = vst.msk [vmem:[%s366_s6] sm:$0xff] %vm227_vm6, %v215_v35 }

</bundles_post_ra>
